<compile_context>
chip_gen: v7x
topology: tpu7x:2x2x1
jax: 0.10.0
libtpu: 0.0.40
codegen_flags: <defaults>
</compile_context>

<pallas_src>
import functools

import jax
import jax.numpy as jnp
from jax.experimental import pallas as pl
from jax.experimental.pallas import tpu as pltpu


def _decoder_kernel(x_ref,
                    w1_ref, b1_ref,      # mlp:   (L, H) bf16, (1, H) f32
                    w2_ref, b2_ref,      # mlp2:  (H, L) bf16, (1, L) f32
                    wh_ref, bh_ref,      # fused heads: (L, Nout) bf16, (1, Nout) f32
                    out_ref,             # (TB, Nout) f32, lane-dense
                    *, n_tanh: int):
    x = x_ref[...].astype(jnp.bfloat16)

    h = jnp.dot(x, w1_ref[...], preferred_element_type=jnp.float32) + b1_ref[...]
    h = jnp.tanh(h).astype(jnp.bfloat16)

    v = jnp.dot(h, w2_ref[...], preferred_element_type=jnp.float32) + b2_ref[...]
    v = jnp.tanh(v).astype(jnp.bfloat16)

    heads = jnp.dot(v, wh_ref[...], preferred_element_type=jnp.float32) + bh_ref[...]
    if n_tanh > 0:
        # tanh only the left/right columns; the rad (mlp3) columns and the
        # zero-padding columns stay linear.  n_tanh is a static Python int.
        col = jax.lax.broadcasted_iota(jnp.int32, heads.shape, 1)
        heads = jnp.where(col < n_tanh, jnp.tanh(heads), heads)
    out_ref[...] = heads.astype(out_ref.dtype)


@functools.partial(jax.jit, static_argnames=("label",))
def _decoder_pallas(x, params, label: int):
    B, L_in = x.shape
    L = params["w_left"].shape[1]
    H = params["w1"].shape[1]

    # ---- fuse the head weights for this (static) label --------------------
    if label == 0:
        wh = params["w3"]
        bh = params["b3"]
        n_tanh = 0
    elif label == 1:
        wh = jnp.concatenate([params["w_right"], params["w3"]], axis=1)
        bh = jnp.concatenate([params["b_right"], params["b3"]], axis=1)
        n_tanh = L
    else:  # label == 2
        wh = jnp.concatenate(
            [params["w_left"], params["w_right"], params["w3"]], axis=1)
        bh = jnp.concatenate(
            [params["b_left"], params["b_right"], params["b3"]], axis=1)
        n_tanh = 2 * L

    n_real = wh.shape[1]
    n_out = max(128, ((n_real + 127) // 128) * 128)   # lane-dense output width
    if n_out != n_real:
        wh = jnp.pad(wh, ((0, 0), (0, n_out - n_real)))
        bh = jnp.pad(bh, ((0, 0), (0, n_out - n_real)))

    # ---- batch tiling ------------------------------------------------------
    if B <= 512:
        TB, Bp, xin = B, B, x                      # single full-array tile
    else:
        TB = 512                                   # fills the 256-wide MXU (M>=256)
        Bp = ((B + TB - 1) // TB) * TB
        xin = jnp.pad(x, ((0, Bp - B), (0, 0))) if Bp != B else x
    grid = (Bp // TB,)

    resident = lambda shape: pl.BlockSpec(shape, lambda i: (0, 0))
    in_specs = [
        pl.BlockSpec((TB, L_in), lambda i: (i, 0)),
        resident(params["w1"].shape), resident(params["b1"].shape),
        resident(params["w2"].shape), resident(params["b2"].shape),
        resident(wh.shape), resident(bh.shape),
    ]
    out_spec = pl.BlockSpec((TB, n_out), lambda i: (i, 0))

    flops = 2 * Bp * (L_in * H + H * L + L * n_out)
    transcendentals = Bp * (H + L + n_tanh)
    bytes_accessed = (
        xin.size * xin.dtype.itemsize
        + sum(int(a.size) * a.dtype.itemsize
              for a in (params["w1"], params["b1"], params["w2"], params["b2"], wh, bh))
        + Bp * n_out * 4)

    out = pl.pallas_call(
        functools.partial(_decoder_kernel, n_tanh=n_tanh),
        out_shape=jax.ShapeDtypeStruct((Bp, n_out), jnp.float32),
        grid=grid,
        in_specs=in_specs,
        out_specs=out_spec,
        compiler_params=pltpu.CompilerParams(
            dimension_semantics=("parallel",)),
        cost_estimate=pl.CostEstimate(
            flops=flops,
            transcendentals=transcendentals,
            bytes_accessed=bytes_accessed),
    )(xin, params["w1"], params["b1"], params["w2"], params["b2"], wh, bh)

    out = out[:B]
    if label == 0:
        return (None, None, out[:, :4])
    elif label == 1:
        return (None, out[:, :L], out[:, L:L + 4])
    else:
        return (out[:, :L], out[:, L:2 * L], out[:, 2 * L:2 * L + 4])


def init_decoder_params(key, latent_size: int, hidden_size: int):
    """Deterministic init mimicking nn.Linear default (U[-1/sqrt(fan_in), ..]).

    Weights are stored pre-transposed as (in_features, out_features) in bf16
    (MXU-native); biases stay f32."""
    def linear(k, fan_in, fan_out):
        kw, kb = jax.random.split(k)
        bound = 1.0 / jnp.sqrt(fan_in)
        w = jax.random.uniform(kw, (fan_in, fan_out), jnp.float32, -bound, bound)
        b = jax.random.uniform(kb, (1, fan_out), jnp.float32, -bound, bound)
        return w.astype(jnp.bfloat16), b

    k1, k2, k3, k4, k5 = jax.random.split(key, 5)
    w1, b1 = linear(k1, latent_size, hidden_size)        # mlp
    w2, b2 = linear(k2, hidden_size, latent_size)        # mlp2
    wl, bl = linear(k3, latent_size, latent_size)        # mlp_left
    wr, br = linear(k4, latent_size, latent_size)        # mlp_right
    w3, b3 = linear(k5, latent_size, 4)                  # mlp3
    return dict(w1=w1, b1=b1, w2=w2, b2=b2,
                w_left=wl, b_left=bl, w_right=wr, b_right=br,
                w3=w3, b3=b3)


def _decoder_ref(x, p, label: int):
    """Pure-JAX f32 reference matching the PyTorch forward (same bf16 weights)."""
    f32 = lambda a: a.astype(jnp.float32)
    v = jnp.tanh(x @ f32(p["w1"]) + p["b1"])
    v = jnp.tanh(v @ f32(p["w2"]) + p["b2"])
    rad = v @ f32(p["w3"]) + p["b3"]
    if label == 0:
        return (None, None, rad)
    right = jnp.tanh(v @ f32(p["w_right"]) + p["b_right"])
    if label == 1:
        return (None, right, rad)
    left = jnp.tanh(v @ f32(p["w_left"]) + p["b_left"])
    return (left, right, rad)


if __name__ == "__main__":
    latent_size = 32
    hidden_size = 64
    batch = 8

    key = jax.random.PRNGKey(0)
    k_param, k_x = jax.random.split(key)
    params = init_decoder_params(k_param, latent_size, hidden_size)
    parent_feature = jax.random.normal(k_x, (batch, latent_size), jnp.float32)

    ok = True
    for label in (0, 1, 2):
        out = _decoder_pallas(parent_feature, params, label)
        ref = _decoder_ref(parent_feature, params, label)
        for o, r in zip(out, ref):
            if o is None and r is None:
                continue
            o = jax.block_until_ready(o)
            # bf16 matmul operands (f32 accumulation) -> loose-ish tolerance.
            if float(jnp.max(jnp.abs(o - r))) > 5e-2:
                ok = False

    if ok:
        print("KERNEL_OK")
</pallas_src>

<mosaic_0001>
module attributes {stable_mosaic.version = 11 : i64} {
  func.func @_decoder_kernel(%arg0: i32, %arg1: memref<8x32xf32, #tpu.memory_space<vmem>>, %arg2: memref<32x64xbf16, #tpu.memory_space<vmem>>, %arg3: memref<1x64xf32, #tpu.memory_space<vmem>>, %arg4: memref<64x32xbf16, #tpu.memory_space<vmem>>, %arg5: memref<1x32xf32, #tpu.memory_space<vmem>>, %arg6: memref<32x128xbf16, #tpu.memory_space<vmem>>, %arg7: memref<1x128xf32, #tpu.memory_space<vmem>>, %arg8: memref<8x128xf32, #tpu.memory_space<vmem>>) attributes {dimension_semantics = [#tpu.dimension_semantics<parallel>], iteration_bounds = array<i64: 1>, scalar_prefetch = 0 : i64, scratch_operands = 0 : i64, tpu.core_type = #tpu.core_type<tc>, window_params = [{transform_indices = @transform_0, window_bounds = array<i64: 8, 32>}, {pipeline_mode = #tpu.pipeline_mode<synchronous>, transform_indices = @transform_1, window_bounds = array<i64: 32, 64>}, {pipeline_mode = #tpu.pipeline_mode<synchronous>, transform_indices = @transform_2, window_bounds = array<i64: 1, 64>}, {pipeline_mode = #tpu.pipeline_mode<synchronous>, transform_indices = @transform_3, window_bounds = array<i64: 64, 32>}, {pipeline_mode = #tpu.pipeline_mode<synchronous>, transform_indices = @transform_4, window_bounds = array<i64: 1, 32>}, {pipeline_mode = #tpu.pipeline_mode<synchronous>, transform_indices = @transform_5, window_bounds = array<i64: 32, 128>}, {pipeline_mode = #tpu.pipeline_mode<synchronous>, transform_indices = @transform_6, window_bounds = array<i64: 1, 128>}, {transform_indices = @transform_7, window_bounds = array<i64: 8, 128>}]} {
    %c0 = arith.constant 0 : index
    %c0_0 = arith.constant 0 : index
    %0 = vector.load %arg1[%c0, %c0_0] : memref<8x32xf32, #tpu.memory_space<vmem>>, vector<8x32xf32>
    %1 = arith.truncf %0 : vector<8x32xf32> to vector<8x32xbf16>
    %c0_1 = arith.constant 0 : index
    %c0_2 = arith.constant 0 : index
    %2 = vector.load %arg2[%c0_1, %c0_2] : memref<32x64xbf16, #tpu.memory_space<vmem>>, vector<32x64xbf16>
    %cst = arith.constant dense<0.000000e+00> : vector<8x64xf32>
    %3 = tpu.matmul %1, %2, %cst {dimension_numbers = #tpu.dot_dimension_numbers<[1], [0], [0], [1], [0, 0, 1, 1], [], []>} : vector<8x32xbf16>, vector<32x64xbf16>, vector<8x64xf32> -> vector<8x64xf32>
    %c0_3 = arith.constant 0 : index
    %c0_4 = arith.constant 0 : index
    %4 = vector.load %arg3[%c0_3, %c0_4] : memref<1x64xf32, #tpu.memory_space<vmem>>, vector<1x64xf32>
    %5 = vector.broadcast %4 : vector<1x64xf32> to vector<8x64xf32>
    %6 = arith.addf %3, %5 : vector<8x64xf32>
    %7 = math.tanh %6 : vector<8x64xf32>
    %8 = arith.truncf %7 : vector<8x64xf32> to vector<8x64xbf16>
    %c0_5 = arith.constant 0 : index
    %c0_6 = arith.constant 0 : index
    %9 = vector.load %arg4[%c0_5, %c0_6] : memref<64x32xbf16, #tpu.memory_space<vmem>>, vector<64x32xbf16>
    %cst_7 = arith.constant dense<0.000000e+00> : vector<8x32xf32>
    %10 = tpu.matmul %8, %9, %cst_7 {dimension_numbers = #tpu.dot_dimension_numbers<[1], [0], [0], [1], [0, 0, 1, 1], [], []>} : vector<8x64xbf16>, vector<64x32xbf16>, vector<8x32xf32> -> vector<8x32xf32>
    %c0_8 = arith.constant 0 : index
    %c0_9 = arith.constant 0 : index
    %11 = vector.load %arg5[%c0_8, %c0_9] : memref<1x32xf32, #tpu.memory_space<vmem>>, vector<1x32xf32>
    %12 = vector.broadcast %11 : vector<1x32xf32> to vector<8x32xf32>
    %13 = arith.addf %10, %12 : vector<8x32xf32>
    %14 = math.tanh %13 : vector<8x32xf32>
    %15 = arith.truncf %14 : vector<8x32xf32> to vector<8x32xbf16>
    %c0_10 = arith.constant 0 : index
    %c0_11 = arith.constant 0 : index
    %16 = vector.load %arg6[%c0_10, %c0_11] : memref<32x128xbf16, #tpu.memory_space<vmem>>, vector<32x128xbf16>
    %cst_12 = arith.constant dense<0.000000e+00> : vector<8x128xf32>
    %17 = tpu.matmul %15, %16, %cst_12 {dimension_numbers = #tpu.dot_dimension_numbers<[1], [0], [0], [1], [0, 0, 1, 1], [], []>} : vector<8x32xbf16>, vector<32x128xbf16>, vector<8x128xf32> -> vector<8x128xf32>
    %c0_13 = arith.constant 0 : index
    %c0_14 = arith.constant 0 : index
    %18 = vector.load %arg7[%c0_13, %c0_14] : memref<1x128xf32, #tpu.memory_space<vmem>>, vector<1x128xf32>
    %19 = vector.broadcast %18 : vector<1x128xf32> to vector<8x128xf32>
    %20 = arith.addf %17, %19 : vector<8x128xf32>
    %c0_15 = arith.constant 0 : index
    %c0_16 = arith.constant 0 : index
    %21 = vector.load %arg8[%c0_15, %c0_16] : memref<8x128xf32, #tpu.memory_space<vmem>>, vector<8x128xf32>
    tpu.vector_store %arg8[%c0_15, %c0_16], %20 {strides = array<i32>} : memref<8x128xf32, #tpu.memory_space<vmem>>, vector<8x128xf32>,
    return
  }
  func.func @transform_0(%arg0: i32) -> (i32, i32) {
    %c0_i32 = arith.constant 0 : i32
    %c0_i32_0 = arith.constant 0 : i32
    return %arg0, %c0_i32 : i32, i32
  }
  func.func @transform_1(%arg0: i32) -> (i32, i32) {
    %c0_i32 = arith.constant 0 : i32
    %c0_i32_0 = arith.constant 0 : i32
    %c0_i32_1 = arith.constant 0 : i32
    return %c0_i32, %c0_i32_0 : i32, i32
  }
  func.func @transform_2(%arg0: i32) -> (i32, i32) {
    %c0_i32 = arith.constant 0 : i32
    %c0_i32_0 = arith.constant 0 : i32
    %c0_i32_1 = arith.constant 0 : i32
    return %c0_i32, %c0_i32_0 : i32, i32
  }
  func.func @transform_3(%arg0: i32) -> (i32, i32) {
    %c0_i32 = arith.constant 0 : i32
    %c0_i32_0 = arith.constant 0 : i32
    %c0_i32_1 = arith.constant 0 : i32
    return %c0_i32, %c0_i32_0 : i32, i32
  }
  func.func @transform_4(%arg0: i32) -> (i32, i32) {
    %c0_i32 = arith.constant 0 : i32
    %c0_i32_0 = arith.constant 0 : i32
    %c0_i32_1 = arith.constant 0 : i32
    return %c0_i32, %c0_i32_0 : i32, i32
  }
  func.func @transform_5(%arg0: i32) -> (i32, i32) {
    %c0_i32 = arith.constant 0 : i32
    %c0_i32_0 = arith.constant 0 : i32
    %c0_i32_1 = arith.constant 0 : i32
    return %c0_i32, %c0_i32_0 : i32, i32
  }
  func.func @transform_6(%arg0: i32) -> (i32, i32) {
    %c0_i32 = arith.constant 0 : i32
    %c0_i32_0 = arith.constant 0 : i32
    %c0_i32_1 = arith.constant 0 : i32
    return %c0_i32, %c0_i32_0 : i32, i32
  }
  func.func @transform_7(%arg0: i32) -> (i32, i32) {
    %c0_i32 = arith.constant 0 : i32
    %c0_i32_0 = arith.constant 0 : i32
    return %arg0, %c0_i32 : i32, i32
  }
}

</mosaic_0001>

<bundles_post_ra>
// kernel: _decoder_pallas.1
= control target key start
LH: loop header
LB: loop body
LE: loop exit
PB: predicated region body
PF: predicated region fallthrough
CT: control target
= control target key end

     0   :  { %v321_v0 = vmov 0.0   ;;  %vm322_vm0 = vmmov 0   ;;  %vm52_vm1 = vcmask 261120   ;;  %vm137_vm2 = vcmask 523264   ;;  %s404_s1 = inlined_call_operand.vmem [shape: bf16[32,64], index: 1, kind: input, shape index: {}]   ;;  %s405_s0 = inlined_call_operand.vmem [shape: f32[8,32], index: 0, kind: input, shape index: {}]   ;;  %s406_s3 = inlined_call_operand.vmem [shape: bf16[64,32], index: 3, kind: input, shape index: {}]   ;;  %s407_s2 = inlined_call_operand.vmem [shape: f32[1,64], index: 2, kind: input, shape index: {}]   ;;  %s408_s5 = inlined_call_operand.vmem [shape: bf16[32,128], index: 5, kind: input, shape index: {}]   ;;  %s409_s4 = inlined_call_operand.vmem [shape: f32[1,32], index: 4, kind: input, shape index: {}]   ;;  %s410_s6 = inlined_call_operand.vmem [shape: f32[1,128], index: 6, kind: input, shape index: {}]   ;;  %s411_s7 = inlined_call_operand.vmem [shape: f32[8,128], index: 7, kind: output, shape index: {}]  }
   0x1   :  { %279 = vmatprep.subr.bf16.mxu0 %v321_v0  ;;  %v309_v1 = vld [vmem:[%s404_s1] sm:$0xff]   ;;  %283 = vmatprep.mubr.msk.bf16.mxu0 %vm322_vm0, %v321_v0  ;;  %v310_v2 = vld [vmem:[%s404_s1 + $0x8] sm:$0xff]   ;;  %v313_v7 = vld [vmem:[%s406_s3 + $0x10] sm:$0xff]  }
   0x2   :  { %287 = vmatprep.subr.bf16.mxu1 %v321_v0  ;;  %295 = vmatprep.mubr.msk.bf16.mxu1 %vm322_vm0, %v321_v0  ;;  %v27_v3 = vld [vmem:[%s405_s0] sm:$0xff]  ;;  %v312_v6 = vld [vmem:[%s406_s3 + $0x8] sm:$0xff]   ;;  %v314_v8 = vld [vmem:[%s406_s3 + $0x18] sm:$0xff]  }
   0x3   :  { %280 = vmatpush3.bf16.msra.mxu0 %v309_v1  ;;  %v28_v4 = vpack.c.bf16 %v27_v3, %v27_v3  ;;  %v311_v5 = vld [vmem:[%s406_s3] sm:$0xff]   ;;  %v316_v18 = vld [vmem:[%s408_s5 + $0x8] sm:$0xff]  }
   0x4   :  { %281 = vmatprep.subr.bf16.mxu0 %v321_v0  ;;  %288 = vmatpush3.bf16.msra.mxu1 %v311_v5  ;;  %v254_v9 = vld [vmem:[%s407_s2] ss:$0 sm:$0xff] }
   0x5   :  { %289 = vmatprep.subr.bf16.mxu1 %v321_v0  ;;  %v315_v17 = vld [vmem:[%s408_s5] sm:$0xff]  }
   0x6   :  { %v258_v19 = vld [vmem:[%s409_s4] ss:$0 sm:$0xff] }
   0x7   :  { %282 = vmatpush3.bf16.msra.mxu0 %v310_v2  ;;  %v264_v27 = vld [vmem:[%s410_s6] ss:$0 sm:$0xff] }
   0x8   :  { %299 = vmatprep.subr.bf16.mxu0 %v321_v0  ;;  %290 = vmatpush3.bf16.msra.mxu1 %v312_v6 }
   0x9   :  { %291 = vmatprep.subr.bf16.mxu1 %v321_v0 }
   0xa   :  { %284 = vmatmul.mubr.msk.bf16.vlgmr.msra.gmra.mrb[0].mxu0 %vm52_vm1, %v28_v4 }
   0xb   :  { %303 = vmatprep.mubr.msk.bf16.mxu0 %vm322_vm0, %v321_v0  ;;  %300 = vmatpush3.bf16.msra.mxu0 %v315_v17 }
   0xc   :  { %292 = vmatpush3.bf16.msra.mxu1 %v313_v7  ;;  %301 = vmatprep.subr.bf16.mxu0 %v321_v0 }
   0xd   :  { %293 = vmatprep.subr.bf16.mxu1 %v321_v0 }
   0xf   :  { %302 = vmatpush3.bf16.msra.mxu0 %v316_v18 }
  0x10   :  { %294 = vmatpush3.bf16.msra.mxu1 %v314_v8 }
  0xdd   :  { %v90_v10 = vpop.f32.mrb[0].mxu0 }
  0xde   :  { %v91_v11 = vadd.f32 %v254_v9, %v90_v10  ;;  %v285_v12 = vpop.f32.mrb[1].mxu0 }
  0xdf   :  { %v93_v13 = vpop.f32.mrb[2].mxu0 }
  0xe0   :  { %317 = vtanh.f32 %v91_v11  ;;  %v286_v14 = vpop.f32.mrb[3].mxu0 }
  0xea   :  { %v318_v15 = vpop.eup %317 }
  0xeb   :  { %v97_v16 = vpack.c.bf16 %v318_v15, %v318_v15 }
  0xed   :  { %296 = vmatmul.mubr.msk.bf16.vlgmr.msra.gmra.mrb[0].mxu1 %vm137_vm2, %v97_v16 }
 0x1c0   :  { %v175_v20 = vpop.f32.mrb[0].mxu1 }
 0x1c1   :  { %v176_v21 = vadd.f32 %v258_v19, %v175_v20  ;;  %v297_v22 = vpop.f32.mrb[1].mxu1 }
 0x1c2   :  { %v178_v23 = vpop.f32.mrb[2].mxu1 }
 0x1c3   :  { %319 = vtanh.f32 %v176_v21  ;;  %v298_v24 = vpop.f32.mrb[3].mxu1 }
 0x1cd   :  { %v320_v25 = vpop.eup %319 }
 0x1ce   :  { %v182_v26 = vpack.c.bf16 %v320_v25, %v320_v25 }
 0x1d0   :  { %304 = vmatmul.mubr.msk.bf16.vlgmr.msra.gmra.mrb[4].mxu0 %vm52_vm1, %v182_v26 }
 0x2a3   :  { %v243_v28 = vpop.f32.mrb[4].mxu0 }
 0x2a4   :  { %v244_v29 = vadd.f32 %v264_v27, %v243_v28  ;;  %v305_v30 = vpop.f32.mrb[5].mxu0 }
 0x2a5   :  { %v246_v31 = vpop.f32.mrb[6].mxu0 }
 0x2a6   :  { %249 = vst [vmem:[%s411_s7] sm:$0xff] %v244_v29  ;;  %v306_v32 = vpop.f32.mrb[7].mxu0 }

</bundles_post_ra>
